<compile_context>
chip_gen: v6e
topology: v6e:2x2x1
jax: 0.10.0
libtpu: 0.0.40
codegen_flags: <defaults>
</compile_context>

<pallas_src>
import functools

import jax
import jax.numpy as jnp
from jax.experimental import pallas as pl
from jax.experimental.pallas import tpu as pltpu

_LANES = 128
_NUM_CORES = 2                  # v7x has 2 TensorCores; no harm on v5e/v6e.
_TARGET_TILE_BYTES = 1 << 20    # ~1 MiB per input per pipeline buffer.


def _cdiv(a, b):
    return -(-a // b)


def _round_up(x, m):
    return _cdiv(x, m) * m


def _quantile_loss_kernel(pb_ref, gt_ref, pw_ref, out_ref, *,
                          quantile, tau, tile_rows, tiles_per_core,
                          n_rows_valid):
    c = pl.program_id(0)   # core split ("parallel")
    i = pl.program_id(1)   # row-tile within this core's range ("arbitrary")

    @pl.when(i == 0)
    def _init():
        out_ref[...] = jnp.zeros_like(out_ref)

    # Load in native dtype (f32 or bf16); upcast in-register for accumulation.
    pb = pb_ref[...].astype(jnp.float32)
    gt = gt_ref[...].astype(jnp.float32)
    pw = pw_ref[...].astype(jnp.float32)

    errors = jnp.abs(gt - pb)
    scaled_w = pw * tau if tau != 1.0 else pw
    r = errors - scaled_w
    # Pinball / quantile loss term: max(q * r, (q - 1) * r).
    contrib = jnp.maximum(quantile * r, (quantile - 1.0) * r)

    # Mask rows past the end of the real data: ragged last tile, and the
    # fully-out-of-range (clamped) tile the second core may nominally own.
    row = jax.lax.broadcasted_iota(jnp.int32, contrib.shape, 0)
    nominal_base = (c * tiles_per_core + i) * tile_rows
    contrib = jnp.where(nominal_base + row < n_rows_valid, contrib, 0.0)

    # (tile_rows,128)->(tile_rows//8,8,128) is a free sublane split; the sum is
    # pure VPU vreg adds and the += hits a full, aligned (8,128) output tile.
    partial = jnp.sum(contrib.reshape(tile_rows // 8, 8, _LANES), axis=0)
    out_ref[...] += partial


def _as_kernel_dtype(x):
    x = jnp.asarray(x)
    if x.dtype in (jnp.float32, jnp.bfloat16):
        return x
    # f16 has no native TPU VPU path; ints/f64 need upcasting anyway.
    return x.astype(jnp.float32)


def smooth_quantile_loss(pred_boxes, gt_boxes, predicted_widths,
                         quantile=0.9, tau=1.0):
    """Pallas implementation of SmoothQuantileLoss.forward. Returns a scalar."""
    pb = _as_kernel_dtype(pred_boxes)
    gt = _as_kernel_dtype(gt_boxes)
    pw = _as_kernel_dtype(predicted_widths)
    assert pb.shape == gt.shape == pw.shape, "inputs must share a shape"

    quantile = float(quantile)
    tau = float(tau)
    n = int(pb.size)
    if n == 0:
        return jnp.float32(0.0)

    # Copy-free flatten.
    pb_f, gt_f, pw_f = pb.reshape(-1), gt.reshape(-1), pw.reshape(-1)

    n_rows = n // _LANES            # number of full 128-lane rows
    n_main = n_rows * _LANES
    n_rem = n - n_main              # < 128 leftover elements

    # Tiny non-128-multiple tail: plain jnp added to the kernel partial sums.
    tail_sum = jnp.float32(0.0)
    if n_rem:
        r_t = (jnp.abs(gt_f[n_main:].astype(jnp.float32)
                       - pb_f[n_main:].astype(jnp.float32))
               - pw_f[n_main:].astype(jnp.float32) * tau)
        tail_sum = jnp.sum(jnp.maximum(quantile * r_t, (quantile - 1.0) * r_t))

    main_sum = jnp.float32(0.0)
    if n_rows:
        def _main_view(x):
            # Aligned case (n % 128 == 0): fully copy-free reshape.
            x = x if n_rem == 0 else x[:n_main]
            return x.reshape(n_rows, _LANES)

        pb2, gt2, pw2 = _main_view(pb_f), _main_view(gt_f), _main_view(pw_f)

        # Dtype-aware tile: ~1 MiB per input per buffer (2048 f32 / 4096 bf16).
        max_itemsize = max(a.dtype.itemsize for a in (pb2, gt2, pw2))
        max_tile_rows = max(
            8, (_TARGET_TILE_BYTES // (_LANES * max_itemsize)) // 8 * 8)
        tile_rows = min(max_tile_rows, _round_up(n_rows, 8))

        n_tiles = _cdiv(n_rows, tile_rows)
        n_core = min(_NUM_CORES, n_tiles)
        tiles_per_core = _cdiv(n_tiles, n_core)

        def in_map(c, i):
            # With an odd tile count the second core's last nominal tile index
            # would be out of range; clamp to the last real tile (its rows are
            # fully masked in the kernel, so it contributes exactly 0).
            return (jnp.minimum(c * tiles_per_core + i, n_tiles - 1), 0)

        blk = pl.BlockSpec((tile_rows, _LANES), in_map)

        kernel = functools.partial(
            _quantile_loss_kernel,
            quantile=quantile, tau=tau, tile_rows=tile_rows,
            tiles_per_core=tiles_per_core, n_rows_valid=n_rows)

        bytes_accessed = int(pb2.size * pb2.dtype.itemsize
                             + gt2.size * gt2.dtype.itemsize
                             + pw2.size * pw2.dtype.itemsize
                             + n_core * 8 * _LANES * 4)

        partials = pl.pallas_call(
            kernel,
            out_shape=jax.ShapeDtypeStruct((n_core * 8, _LANES), jnp.float32),
            grid=(n_core, tiles_per_core),
            in_specs=[blk, blk, blk],
            out_specs=pl.BlockSpec((8, _LANES), lambda c, i: (c, 0)),
            compiler_params=pltpu.CompilerParams(
                dimension_semantics=("parallel", "arbitrary"),
                vmem_limit_bytes=32 * 1024 * 1024),
            cost_estimate=pl.CostEstimate(
                flops=8 * n_main, transcendentals=0,
                bytes_accessed=bytes_accessed),
        )(pb2, gt2, pw2)
        main_sum = jnp.sum(partials)

    return (main_sum + tail_sum) * jnp.float32(1.0 / n)


def _reference_loss(pred_boxes, gt_boxes, predicted_widths, quantile, tau):
    """Pure-JAX re-implementation of the PyTorch forward (sanity check)."""
    pb = jnp.asarray(pred_boxes, jnp.float32)
    gt = jnp.asarray(gt_boxes, jnp.float32)
    pw = jnp.asarray(predicted_widths, jnp.float32)
    r = jnp.abs(gt - pb) - pw * tau
    return jnp.mean(jnp.maximum(quantile * r, (quantile - 1.0) * r))


if __name__ == "__main__":
    key = jax.random.PRNGKey(0)

    def make(k, b):
        k1, k2, k3, k4 = jax.random.split(k, 4)
        gt_min = jax.random.uniform(k1, (b, 2), minval=0.0, maxval=50.0)
        gt_wh = jax.random.uniform(k2, (b, 2), minval=5.0, maxval=40.0)
        gt = jnp.concatenate([gt_min, gt_min + gt_wh], axis=1)       # [B, 4]
        pr = gt + 2.0 * jax.random.normal(k3, (b, 4))                # [B, 4]
        pw = jnp.abs(jax.random.normal(k4, (b, 4))) * 4.0 + 1.0      # [B, 4]
        return pr, gt, pw

    # Small demo consistent with the module: [B, 4] boxes / widths.
    pr, gt, pw = make(key, 32)
    loss = smooth_quantile_loss(pr, gt, pw, quantile=0.9, tau=1.0)
    jax.block_until_ready(loss)
    ref = _reference_loss(pr, gt, pw, 0.9, 1.0)
    assert abs(float(loss) - float(ref)) <= 1e-4 * max(1.0, abs(float(ref))), (
        float(loss), float(ref))

    # Extra checks exercising ragged tiles, the <128 tail path, the two-core
    # split with multiple tiles per core, and native bf16 streaming.
    extra_checks = [
        (20000, 0.9, 0.8, jnp.float32),   # aligned, single ragged tile
        (37, 0.85, 1.0, jnp.float32),     # n % 128 != 0 -> kernel prefix + jnp tail
        (200000, 0.9, 1.2, jnp.float32),  # multi-tile, two-core split
        (4096, 0.9, 1.0, jnp.bfloat16),   # native bf16 path
    ]
    for b, q, t, dt in extra_checks:
        key, sub = jax.random.split(key)
        pr, gt, pw = make(sub, b)
        pr, gt, pw = pr.astype(dt), gt.astype(dt), pw.astype(dt)
        loss = smooth_quantile_loss(pr, gt, pw, quantile=q, tau=t)
        jax.block_until_ready(loss)
        ref = _reference_loss(pr, gt, pw, q, t)
        assert abs(float(loss) - float(ref)) <= 3e-3 * max(1.0, abs(float(ref))), (
            b, float(loss), float(ref))

    print("KERNEL_OK")
</pallas_src>

<mosaic_0001>
module attributes {stable_mosaic.version = 11 : i64} {
  func.func @_quantile_loss_kernel(%arg0: i32, %arg1: i32, %arg2: memref<8x128xf32, #tpu.memory_space<vmem>>, %arg3: memref<8x128xf32, #tpu.memory_space<vmem>>, %arg4: memref<8x128xf32, #tpu.memory_space<vmem>>, %arg5: memref<8x128xf32, #tpu.memory_space<vmem>>) attributes {dimension_semantics = [#tpu.dimension_semantics<parallel>, #tpu.dimension_semantics<arbitrary>], iteration_bounds = array<i64: 1, 1>, scalar_prefetch = 0 : i64, scratch_operands = 0 : i64, tpu.core_type = #tpu.core_type<tc>, window_params = [{transform_indices = @transform_0, window_bounds = array<i64: 8, 128>}, {transform_indices = @transform_1, window_bounds = array<i64: 8, 128>}, {transform_indices = @transform_2, window_bounds = array<i64: 8, 128>}, {transform_indices = @transform_3, window_bounds = array<i64: 8, 128>}]} {
    %c0_i32 = arith.constant 0 : i32
    %0 = arith.cmpi eq, %arg1, %c0_i32 : i32
    %1 = arith.extui %0 : i1 to i32
    %c0_i32_0 = arith.constant 0 : i32
    %2 = arith.cmpi ne, %1, %c0_i32_0 : i32
    scf.if %2 {
      %cst_14 = arith.constant 0.000000e+00 : f32
      %29 = vector.broadcast %cst_14 : f32 to vector<8x128xf32>
      %c0_15 = arith.constant 0 : index
      %c0_16 = arith.constant 0 : index
      %30 = vector.load %arg5[%c0_15, %c0_16] : memref<8x128xf32, #tpu.memory_space<vmem>>, vector<8x128xf32>
      tpu.vector_store %arg5[%c0_15, %c0_16], %29 {strides = array<i32>} : memref<8x128xf32, #tpu.memory_space<vmem>>, vector<8x128xf32>,
    } else {
    }
    %c0 = arith.constant 0 : index
    %c0_1 = arith.constant 0 : index
    %3 = vector.load %arg2[%c0, %c0_1] : memref<8x128xf32, #tpu.memory_space<vmem>>, vector<8x128xf32>
    %c0_2 = arith.constant 0 : index
    %c0_3 = arith.constant 0 : index
    %4 = vector.load %arg3[%c0_2, %c0_3] : memref<8x128xf32, #tpu.memory_space<vmem>>, vector<8x128xf32>
    %c0_4 = arith.constant 0 : index
    %c0_5 = arith.constant 0 : index
    %5 = vector.load %arg4[%c0_4, %c0_5] : memref<8x128xf32, #tpu.memory_space<vmem>>, vector<8x128xf32>
    %6 = arith.subf %4, %3 : vector<8x128xf32>
    %7 = math.absf %6 : vector<8x128xf32>
    %8 = arith.subf %7, %5 : vector<8x128xf32>
    %cst = arith.constant 0.899999976 : f32
    %9 = vector.broadcast %cst : f32 to vector<8x128xf32>
    %10 = arith.mulf %9, %8 : vector<8x128xf32>
    %cst_6 = arith.constant -1.000000e-01 : f32
    %11 = vector.broadcast %cst_6 : f32 to vector<8x128xf32>
    %12 = arith.mulf %11, %8 : vector<8x128xf32>
    %13 = arith.maximumf %10, %12 : vector<8x128xf32>
    %14 = tpu.iota {dimensions = array<i32: 0>} : vector<8x128xi32>
    %c1_i32 = arith.constant 1 : i32
    %15 = arith.muli %arg0, %c1_i32 : i32
    %16 = arith.addi %15, %arg1 : i32
    %c8_i32 = arith.constant 8 : i32
    %17 = arith.muli %16, %c8_i32 : i32
    %18 = vector.broadcast %17 : i32 to vector<8x128xi32>
    %19 = arith.addi %18, %14 : vector<8x128xi32>
    %c1_i32_7 = arith.constant 1 : i32
    %20 = vector.broadcast %c1_i32_7 : i32 to vector<8x128xi32>
    %21 = arith.cmpi slt, %19, %20 : vector<8x128xi32>
    %cst_8 = arith.constant 0.000000e+00 : f32
    %22 = vector.broadcast %cst_8 : f32 to vector<8x128xf32>
    %23 = arith.select %21, %13, %22 : vector<8x128xi1>, vector<8x128xf32>
    %24 = vector.shape_cast %23 : vector<8x128xf32> to vector<1x8x128xf32>
    %cst_9 = arith.constant dense<0.000000e+00> : vector<8x128xf32>
    %25 = vector.multi_reduction <add>, %24, %cst_9 [0] : vector<1x8x128xf32> to vector<8x128xf32>
    %c0_10 = arith.constant 0 : index
    %c0_11 = arith.constant 0 : index
    %26 = vector.load %arg5[%c0_10, %c0_11] : memref<8x128xf32, #tpu.memory_space<vmem>>, vector<8x128xf32>
    %27 = arith.addf %26, %25 : vector<8x128xf32>
    %c0_12 = arith.constant 0 : index
    %c0_13 = arith.constant 0 : index
    %28 = vector.load %arg5[%c0_12, %c0_13] : memref<8x128xf32, #tpu.memory_space<vmem>>, vector<8x128xf32>
    tpu.vector_store %arg5[%c0_12, %c0_13], %27 {strides = array<i32>} : memref<8x128xf32, #tpu.memory_space<vmem>>, vector<8x128xf32>,
    return
  }
  func.func @transform_0(%arg0: i32, %arg1: i32) -> (i32, i32) {
    %c1_i32 = arith.constant 1 : i32
    %0 = arith.muli %arg0, %c1_i32 : i32
    %1 = arith.addi %0, %arg1 : i32
    %c0_i32 = arith.constant 0 : i32
    %2 = arith.minsi %1, %c0_i32 : i32
    %c0_i32_0 = arith.constant 0 : i32
    %c0_i32_1 = arith.constant 0 : i32
    return %2, %c0_i32_0 : i32, i32
  }
  func.func @transform_1(%arg0: i32, %arg1: i32) -> (i32, i32) {
    %c1_i32 = arith.constant 1 : i32
    %0 = arith.muli %arg0, %c1_i32 : i32
    %1 = arith.addi %0, %arg1 : i32
    %c0_i32 = arith.constant 0 : i32
    %2 = arith.minsi %1, %c0_i32 : i32
    %c0_i32_0 = arith.constant 0 : i32
    %c0_i32_1 = arith.constant 0 : i32
    return %2, %c0_i32_0 : i32, i32
  }
  func.func @transform_2(%arg0: i32, %arg1: i32) -> (i32, i32) {
    %c1_i32 = arith.constant 1 : i32
    %0 = arith.muli %arg0, %c1_i32 : i32
    %1 = arith.addi %0, %arg1 : i32
    %c0_i32 = arith.constant 0 : i32
    %2 = arith.minsi %1, %c0_i32 : i32
    %c0_i32_0 = arith.constant 0 : i32
    %c0_i32_1 = arith.constant 0 : i32
    return %2, %c0_i32_0 : i32, i32
  }
  func.func @transform_3(%arg0: i32, %arg1: i32) -> (i32, i32) {
    %c0_i32 = arith.constant 0 : i32
    %c0_i32_0 = arith.constant 0 : i32
    return %arg0, %c0_i32 : i32, i32
  }
}

</mosaic_0001>

<bundles_post_ra>
// kernel: tpu_custom_call.1
= control target key start
LH: loop header
LB: loop body
LE: loop exit
PB: predicated region body
PF: predicated region fallthrough
CT: control target
= control target key end

     0   :  { %8 = vsyncpa [#allocation3], 0  ;;  %s256_s0 = inlined_call_operand.hbm [shape: f32[1,128], index: 0, kind: input, shape index: {}]   ;;  %s257_s1 = inlined_call_operand.vmem [shape: f32[1,128], index: 1, kind: input, shape index: {}]   ;;  %s258_s2 = inlined_call_operand.vmem [shape: f32[1,128], index: 2, kind: input, shape index: {}]   ;;  %s259_s3 = inlined_call_operand.hbm [shape: f32[8,128], index: 3, kind: output, shape index: {}]  }
   0x1   :  { %9 = vsyncpa [#allocation4], 0 }
   0x2   :  { %20 = vsyncadd [#allocation3], 112  ;;  %s220_s12 = smov [#allocation2]  }
   0x3   :  { %s24_s13 = sshll.u32 %s220_s12, 4  ;;  %s25_s13 = int_to_ptr.vmem [resolvable:$true] %s24_s13 }
   0x4   :  { %s184_s14 = scalar_lea.vmem %s25_s13, 16  ;;  %s188_s15 = scalar_lea.vmem %s25_s13, 128 }
   0x5   :  { %p185_p0 = scmp.ne.s32.totalorder %s25_s13, %s184_s14  ;;  %p189_p1 = scmp.lt.s32.totalorder %s25_s13, %s25_s13 }
   0x6   :  { %p190_p2 = scmp.lt.s32.totalorder %s188_s15, %s184_s14 }
   0x8   :  { %p191_p3 = por %p190_p2, %p189_p1 }
   0xa   :  { %p192_p4 = pnand %p191_p3, %p185_p0 }
   0xc   :  { %195 = shalt.err (!%p192_p4)
}
   0xd   :  { %s221_s16 = smov 16   ;;  %s222_s17 = smov 1  }
   0xe   :  { %30 = dma.hbm_to_vmem [thread:$0]  %s256_s0, 16, %s25_s13, [#allocation3], %s221_s16, %s221_s16, %s222_s17  }
   0xf   :  { %216 = dma.done.wait [#allocation3], 128  }
  0x10   :  { %217 = vsyncadd [#allocation3], 4294967168  ;;  %v127_v0 = vld [vmem:[#allocation2] sm:$0xff]  ;;  %v136_v2 = vlaneseq  ;;  %s223_s0 = smov [#allocation5]  }
  0x11   :  { %v128_v1 = vld [vmem:[%s257_s1] sm:$0xff]  ;;  %s154_s24 = sshll.u32 %s223_s0, 4  ;;  %s155_s24 = int_to_ptr.vmem [resolvable:$true] %s154_s24 }
  0x12   :  { %v130_v3 = vsub.f32 %v128_v1, %v127_v0  ;;  %v129_v4 = vld [vmem:[%s258_s2] sm:$0xff]  ;;  %v137_v6 = vshrl.u32 %v136_v2, 7  ;;  %s196_s25 = scalar_lea.vmem %s155_s24, 128  ;;  %p201_p6 = scmp.lt.s32.totalorder %s155_s24, %s155_s24 }
  0x13   :  { %p197_p5 = scmp.ne.s32.totalorder %s155_s24, %s196_s25  ;;  %p202_p7 = scmp.lt.s32.totalorder %s196_s25, %s196_s25 }
  0x14   :  { %v131_v5 = vand.u32 2147483647, %v130_v3  ;;  %vm142_vm0 = vcmp.lt.s32.totalorder %v137_v6, 1 }
  0x15   :  { %p203_p8 = por %p202_p7, %p201_p6 }
  0x16   :  { %v132_v7 = vsub.f32 %v131_v5, %v129_v4 }
  0x17   :  { %p204_p9 = pnand %p203_p8, %p197_p5 }
  0x18   :  { %v133_v8 = vmul.f32 0.9, %v132_v7  ;;  %v134_v9 = vmul.f32 -0.1, %v132_v7 }
  0x1a   :  { %v135_v10 = vmax.f32 %v133_v8, %v134_v9 }
  0x1c   :  { %v143_v11 = vsel %vm142_vm0, %v135_v10, 0.0 }
  0x1d   :  { %147 = vst [vmem:[#allocation5] sm:$0xff] %v143_v11 }
  0x1e   :  { %207 = shalt.err (!%p204_p9)
}
  0x1f   :  { %157 = dma.vmem_to_hbm [thread:$0]  %s155_s24, 128, %s259_s3, [#allocation4]  }
  0x20   :  { %218 = dma.done.wait [#allocation4], 128  }
  0x21   :  { %219 = vsyncadd [#allocation4], 4294967168 }
  0x22   :  { %161 = vsyncpa [#allocation3], 1 }
  0x23   :  { %162 = vsyncpa [#allocation4], 1 }

</bundles_post_ra>
